<compile_context>
chip_gen: v7x
topology: tpu7x:2x2x1
jax: 0.10.0
libtpu: 0.0.40
codegen_flags: <defaults>
</compile_context>

<pallas_src>
import functools

import jax
import jax.numpy as jnp
from jax.experimental import pallas as pl
from jax.experimental.pallas import tpu as pltpu


def _round_up(x, m):
    return (x + m - 1) // m * m


def _pad2(a, rows, cols):
    return jnp.pad(a, ((0, rows - a.shape[0]), (0, cols - a.shape[1])))


def _make_mlp_kernel(num_hidden, neg_slope):
    """Fused kernel: x tile + all layer params -> output tile, layers unrolled."""

    def kernel(x_ref, *refs):
        o_ref = refs[-1]
        h = x_ref[...]  # (tm, K) f32, zero-padded
        idx = 0
        for _ in range(num_hidden):
            w_ref, scale_ref, shift_ref = refs[idx], refs[idx + 1], refs[idx + 2]
            idx += 3
            # bf16 operands, f32 accumulation on the MXU.
            acc = jnp.dot(h.astype(w_ref.dtype), w_ref[...],
                          preferred_element_type=jnp.float32)
            # folded Linear-bias + eval-mode BatchNorm1d: y = acc*scale + shift
            acc = acc * scale_ref[...] + shift_ref[...]
            # LeakyReLU, negative_slope = 0.01 (kept in f32 on the VPU).
            h = jnp.where(acc >= 0, acc, neg_slope * acc)
        w_ref, b_ref = refs[idx], refs[idx + 1]
        acc = jnp.dot(h.astype(w_ref.dtype), w_ref[...],
                      preferred_element_type=jnp.float32) + b_ref[...]
        o_ref[...] = acc.astype(o_ref.dtype)

    return kernel


def init_mlp_params(key, in_features, intermediate_size, out_features,
                    num_hidden_layers, bias=True, eps=1e-5, lane=128,
                    compute_dtype=jnp.bfloat16):
    """Deterministic synthetic params matching the PyTorch module's shapes.

    Returns fusion-ready padded params:
      hidden[i] = (w (K_pad, F_pad) bf16, scale (1, F_pad) f32, shift (1, F_pad) f32)
                  with the Linear bias pre-folded into `shift`.
      out       = (w (F_pad, OUT_pad) bf16, b (1, OUT_pad) f32)
    Padding columns/rows are exact zeros, so they never change the result.
    """
    f_pad = _round_up(max(intermediate_size, 1), lane)
    in_pad = _round_up(in_features, lane)
    out_pad = _round_up(max(out_features, 1), lane)
    params = {"hidden": [], "out": None,
              "in_features": in_features, "in_pad": in_pad,
              "out_features": out_features}
    fan_in, fan_in_pad = in_features, in_pad
    for _ in range(num_hidden_layers):
        key, kw, kb, kg, kbe, km, kv = jax.random.split(key, 7)
        w = jax.random.normal(kw, (fan_in, intermediate_size),
                              jnp.float32) / jnp.sqrt(fan_in)
        b = (0.1 * jax.random.normal(kb, (intermediate_size,), jnp.float32)
             if bias else jnp.zeros((intermediate_size,), jnp.float32))
        # BatchNorm1d parameters / running stats (eval-mode semantics).
        gamma = 1.0 + 0.1 * jax.random.normal(kg, (intermediate_size,), jnp.float32)
        beta = 0.1 * jax.random.normal(kbe, (intermediate_size,), jnp.float32)
        running_mean = 0.1 * jax.random.normal(km, (intermediate_size,), jnp.float32)
        running_var = jnp.abs(1.0 + 0.1 * jax.random.normal(
            kv, (intermediate_size,), jnp.float32))
        scale = gamma / jnp.sqrt(running_var + eps)
        # Fold Linear bias into BN shift: scale*(xW + b) + (beta - mean*scale)
        shift = b * scale + (beta - running_mean * scale)
        params["hidden"].append((
            _pad2(w, fan_in_pad, f_pad).astype(compute_dtype),
            _pad2(scale.reshape(1, -1), 1, f_pad),
            _pad2(shift.reshape(1, -1), 1, f_pad),
        ))
        fan_in, fan_in_pad = intermediate_size, f_pad
    if out_features > 0:
        key, kw, kb = jax.random.split(key, 3)
        w = jax.random.normal(kw, (fan_in, out_features),
                              jnp.float32) / jnp.sqrt(fan_in)
        b = (0.1 * jax.random.normal(kb, (out_features,), jnp.float32)
             if bias else jnp.zeros((out_features,), jnp.float32))
        params["out"] = (_pad2(w, fan_in_pad, out_pad).astype(compute_dtype),
                         _pad2(b.reshape(1, -1), 1, out_pad))
    return params


def mlp_forward(x_nchw, params, *, neg_slope=0.01, block_m=256):
    """Flatten + fused (Linear/BN/LeakyReLU)*H + Linear, one pallas_call."""
    assert params["out"] is not None, "out_features == 0 not supported here"
    n = x_nchw.shape[0]
    x = x_nchw.reshape(n, -1).astype(jnp.float32)
    assert x.shape[1] == params["in_features"]

    k_pad = params["in_pad"]
    tm = min(block_m, _round_up(n, 8))       # sublane-aligned batch tile
    n_pad = _round_up(n, tm)
    x_pad = jnp.pad(x, ((0, n_pad - n), (0, k_pad - x.shape[1])))

    flat_inputs = [x_pad]
    in_specs = [pl.BlockSpec((tm, k_pad), lambda i: (i, 0))]
    for (w, scale, shift) in params["hidden"]:
        flat_inputs += [w, scale, shift]
        in_specs += [pl.BlockSpec(w.shape, lambda i: (0, 0)),
                     pl.BlockSpec(scale.shape, lambda i: (0, 0)),
                     pl.BlockSpec(shift.shape, lambda i: (0, 0))]
    w_out, b_out = params["out"]
    flat_inputs += [w_out, b_out]
    in_specs += [pl.BlockSpec(w_out.shape, lambda i: (0, 0)),
                 pl.BlockSpec(b_out.shape, lambda i: (0, 0))]
    out_pad = w_out.shape[1]

    kernel = _make_mlp_kernel(len(params["hidden"]), neg_slope)
    y_pad = pl.pallas_call(
        kernel,
        out_shape=jax.ShapeDtypeStruct((n_pad, out_pad), jnp.float32),
        grid=(n_pad // tm,),
        in_specs=in_specs,
        out_specs=pl.BlockSpec((tm, out_pad), lambda i: (i, 0)),
        compiler_params=pltpu.CompilerParams(
            dimension_semantics=("parallel",),   # megacore splits batch on v7x
            vmem_limit_bytes=64 << 20),
    )(*flat_inputs)
    return y_pad[:n, :params["out_features"]]


def mlp_reference(x_nchw, params, *, neg_slope=0.01):
    """Pure-JAX reference using the same padded bf16 weights (numerics-matched)."""
    n = x_nchw.shape[0]
    h = x_nchw.reshape(n, -1).astype(jnp.float32)
    h = jnp.pad(h, ((0, 0), (0, params["in_pad"] - h.shape[1])))
    for (w, scale, shift) in params["hidden"]:
        acc = jnp.dot(h.astype(w.dtype), w, preferred_element_type=jnp.float32)
        acc = acc * scale + shift
        h = jnp.where(acc >= 0, acc, neg_slope * acc)
    w_out, b_out = params["out"]
    acc = jnp.dot(h.astype(w_out.dtype), w_out,
                  preferred_element_type=jnp.float32) + b_out
    return acc[:, :params["out_features"]]


if __name__ == "__main__":
    key = jax.random.PRNGKey(0)
    k_x, k_p = jax.random.split(key)

    # Small shapes consistent with the module: batch=2, C=4, H=W=16
    x = jax.random.normal(k_x, (2, 4, 16, 16), jnp.float32)

    in_features = 4 * 16 * 16          # 1024
    intermediate_size = 32
    out_features = 8
    num_hidden_layers = 2

    params = init_mlp_params(k_p, in_features, intermediate_size,
                             out_features, num_hidden_layers, bias=True)

    fwd = jax.jit(functools.partial(mlp_forward, params=params))
    out = fwd(x)
    jax.block_until_ready(out)
    assert out.shape == (2, out_features), out.shape

    ref = mlp_reference(x, params)
    assert bool(jnp.allclose(out, ref, atol=1e-2, rtol=1e-2)), (out, ref)
    print("KERNEL_OK")
</pallas_src>

<mosaic_0001>
module attributes {stable_mosaic.version = 11 : i64} {
  func.func @kernel(%arg0: i32, %arg1: memref<8x1024xf32, #tpu.memory_space<vmem>>, %arg2: memref<1024x128xbf16, #tpu.memory_space<vmem>>, %arg3: memref<1x128xf32, #tpu.memory_space<vmem>>, %arg4: memref<1x128xf32, #tpu.memory_space<vmem>>, %arg5: memref<128x128xbf16, #tpu.memory_space<vmem>>, %arg6: memref<1x128xf32, #tpu.memory_space<vmem>>, %arg7: memref<1x128xf32, #tpu.memory_space<vmem>>, %arg8: memref<128x128xbf16, #tpu.memory_space<vmem>>, %arg9: memref<1x128xf32, #tpu.memory_space<vmem>>, %arg10: memref<8x128xf32, #tpu.memory_space<vmem>>) attributes {dimension_semantics = [#tpu.dimension_semantics<parallel>], iteration_bounds = array<i64: 1>, scalar_prefetch = 0 : i64, scratch_operands = 0 : i64, tpu.core_type = #tpu.core_type<tc>, window_params = [{transform_indices = @transform_0, window_bounds = array<i64: 8, 1024>}, {pipeline_mode = #tpu.pipeline_mode<synchronous>, transform_indices = @transform_1, window_bounds = array<i64: 1024, 128>}, {pipeline_mode = #tpu.pipeline_mode<synchronous>, transform_indices = @transform_2, window_bounds = array<i64: 1, 128>}, {pipeline_mode = #tpu.pipeline_mode<synchronous>, transform_indices = @transform_3, window_bounds = array<i64: 1, 128>}, {pipeline_mode = #tpu.pipeline_mode<synchronous>, transform_indices = @transform_4, window_bounds = array<i64: 128, 128>}, {pipeline_mode = #tpu.pipeline_mode<synchronous>, transform_indices = @transform_5, window_bounds = array<i64: 1, 128>}, {pipeline_mode = #tpu.pipeline_mode<synchronous>, transform_indices = @transform_6, window_bounds = array<i64: 1, 128>}, {pipeline_mode = #tpu.pipeline_mode<synchronous>, transform_indices = @transform_7, window_bounds = array<i64: 128, 128>}, {pipeline_mode = #tpu.pipeline_mode<synchronous>, transform_indices = @transform_8, window_bounds = array<i64: 1, 128>}, {transform_indices = @transform_9, window_bounds = array<i64: 8, 128>}]} {
    %c0 = arith.constant 0 : index
    %c0_0 = arith.constant 0 : index
    %0 = vector.load %arg1[%c0, %c0_0] : memref<8x1024xf32, #tpu.memory_space<vmem>>, vector<8x1024xf32>
    %1 = arith.truncf %0 : vector<8x1024xf32> to vector<8x1024xbf16>
    %c0_1 = arith.constant 0 : index
    %c0_2 = arith.constant 0 : index
    %2 = vector.load %arg2[%c0_1, %c0_2] : memref<1024x128xbf16, #tpu.memory_space<vmem>>, vector<1024x128xbf16>
    %cst = arith.constant dense<0.000000e+00> : vector<8x128xf32>
    %3 = tpu.matmul %1, %2, %cst {dimension_numbers = #tpu.dot_dimension_numbers<[1], [0], [0], [1], [0, 0, 1, 1], [], []>} : vector<8x1024xbf16>, vector<1024x128xbf16>, vector<8x128xf32> -> vector<8x128xf32>
    %c0_3 = arith.constant 0 : index
    %c0_4 = arith.constant 0 : index
    %4 = vector.load %arg3[%c0_3, %c0_4] : memref<1x128xf32, #tpu.memory_space<vmem>>, vector<1x128xf32>
    %5 = vector.broadcast %4 : vector<1x128xf32> to vector<8x128xf32>
    %6 = arith.mulf %3, %5 : vector<8x128xf32>
    %c0_5 = arith.constant 0 : index
    %c0_6 = arith.constant 0 : index
    %7 = vector.load %arg4[%c0_5, %c0_6] : memref<1x128xf32, #tpu.memory_space<vmem>>, vector<1x128xf32>
    %8 = vector.broadcast %7 : vector<1x128xf32> to vector<8x128xf32>
    %9 = arith.addf %6, %8 : vector<8x128xf32>
    %cst_7 = arith.constant 0.000000e+00 : f32
    %10 = vector.broadcast %cst_7 : f32 to vector<8x128xf32>
    %11 = arith.cmpf oge, %9, %10 : vector<8x128xf32>
    %cst_8 = arith.constant 0.00999999977 : f32
    %12 = vector.broadcast %cst_8 : f32 to vector<8x128xf32>
    %13 = arith.mulf %12, %9 : vector<8x128xf32>
    %14 = arith.select %11, %9, %13 : vector<8x128xi1>, vector<8x128xf32>
    %15 = arith.truncf %14 : vector<8x128xf32> to vector<8x128xbf16>
    %c0_9 = arith.constant 0 : index
    %c0_10 = arith.constant 0 : index
    %16 = vector.load %arg5[%c0_9, %c0_10] : memref<128x128xbf16, #tpu.memory_space<vmem>>, vector<128x128xbf16>
    %cst_11 = arith.constant dense<0.000000e+00> : vector<8x128xf32>
    %17 = tpu.matmul %15, %16, %cst_11 {dimension_numbers = #tpu.dot_dimension_numbers<[1], [0], [0], [1], [0, 0, 1, 1], [], []>} : vector<8x128xbf16>, vector<128x128xbf16>, vector<8x128xf32> -> vector<8x128xf32>
    %c0_12 = arith.constant 0 : index
    %c0_13 = arith.constant 0 : index
    %18 = vector.load %arg6[%c0_12, %c0_13] : memref<1x128xf32, #tpu.memory_space<vmem>>, vector<1x128xf32>
    %19 = vector.broadcast %18 : vector<1x128xf32> to vector<8x128xf32>
    %20 = arith.mulf %17, %19 : vector<8x128xf32>
    %c0_14 = arith.constant 0 : index
    %c0_15 = arith.constant 0 : index
    %21 = vector.load %arg7[%c0_14, %c0_15] : memref<1x128xf32, #tpu.memory_space<vmem>>, vector<1x128xf32>
    %22 = vector.broadcast %21 : vector<1x128xf32> to vector<8x128xf32>
    %23 = arith.addf %20, %22 : vector<8x128xf32>
    %cst_16 = arith.constant 0.000000e+00 : f32
    %24 = vector.broadcast %cst_16 : f32 to vector<8x128xf32>
    %25 = arith.cmpf oge, %23, %24 : vector<8x128xf32>
    %cst_17 = arith.constant 0.00999999977 : f32
    %26 = vector.broadcast %cst_17 : f32 to vector<8x128xf32>
    %27 = arith.mulf %26, %23 : vector<8x128xf32>
    %28 = arith.select %25, %23, %27 : vector<8x128xi1>, vector<8x128xf32>
    %29 = arith.truncf %28 : vector<8x128xf32> to vector<8x128xbf16>
    %c0_18 = arith.constant 0 : index
    %c0_19 = arith.constant 0 : index
    %30 = vector.load %arg8[%c0_18, %c0_19] : memref<128x128xbf16, #tpu.memory_space<vmem>>, vector<128x128xbf16>
    %cst_20 = arith.constant dense<0.000000e+00> : vector<8x128xf32>
    %31 = tpu.matmul %29, %30, %cst_20 {dimension_numbers = #tpu.dot_dimension_numbers<[1], [0], [0], [1], [0, 0, 1, 1], [], []>} : vector<8x128xbf16>, vector<128x128xbf16>, vector<8x128xf32> -> vector<8x128xf32>
    %c0_21 = arith.constant 0 : index
    %c0_22 = arith.constant 0 : index
    %32 = vector.load %arg9[%c0_21, %c0_22] : memref<1x128xf32, #tpu.memory_space<vmem>>, vector<1x128xf32>
    %33 = vector.broadcast %32 : vector<1x128xf32> to vector<8x128xf32>
    %34 = arith.addf %31, %33 : vector<8x128xf32>
    %c0_23 = arith.constant 0 : index
    %c0_24 = arith.constant 0 : index
    %35 = vector.load %arg10[%c0_23, %c0_24] : memref<8x128xf32, #tpu.memory_space<vmem>>, vector<8x128xf32>
    tpu.vector_store %arg10[%c0_23, %c0_24], %34 {strides = array<i32>} : memref<8x128xf32, #tpu.memory_space<vmem>>, vector<8x128xf32>,
    return
  }
  func.func @transform_0(%arg0: i32) -> (i32, i32) {
    %c0_i32 = arith.constant 0 : i32
    %c0_i32_0 = arith.constant 0 : i32
    return %arg0, %c0_i32 : i32, i32
  }
  func.func @transform_1(%arg0: i32) -> (i32, i32) {
    %c0_i32 = arith.constant 0 : i32
    %c0_i32_0 = arith.constant 0 : i32
    %c0_i32_1 = arith.constant 0 : i32
    return %c0_i32, %c0_i32_0 : i32, i32
  }
  func.func @transform_2(%arg0: i32) -> (i32, i32) {
    %c0_i32 = arith.constant 0 : i32
    %c0_i32_0 = arith.constant 0 : i32
    %c0_i32_1 = arith.constant 0 : i32
    return %c0_i32, %c0_i32_0 : i32, i32
  }
  func.func @transform_3(%arg0: i32) -> (i32, i32) {
    %c0_i32 = arith.constant 0 : i32
    %c0_i32_0 = arith.constant 0 : i32
    %c0_i32_1 = arith.constant 0 : i32
    return %c0_i32, %c0_i32_0 : i32, i32
  }
  func.func @transform_4(%arg0: i32) -> (i32, i32) {
    %c0_i32 = arith.constant 0 : i32
    %c0_i32_0 = arith.constant 0 : i32
    %c0_i32_1 = arith.constant 0 : i32
    return %c0_i32, %c0_i32_0 : i32, i32
  }
  func.func @transform_5(%arg0: i32) -> (i32, i32) {
    %c0_i32 = arith.constant 0 : i32
    %c0_i32_0 = arith.constant 0 : i32
    %c0_i32_1 = arith.constant 0 : i32
    return %c0_i32, %c0_i32_0 : i32, i32
  }
  func.func @transform_6(%arg0: i32) -> (i32, i32) {
    %c0_i32 = arith.constant 0 : i32
    %c0_i32_0 = arith.constant 0 : i32
    %c0_i32_1 = arith.constant 0 : i32
    return %c0_i32, %c0_i32_0 : i32, i32
  }
  func.func @transform_7(%arg0: i32) -> (i32, i32) {
    %c0_i32 = arith.constant 0 : i32
    %c0_i32_0 = arith.constant 0 : i32
    %c0_i32_1 = arith.constant 0 : i32
    return %c0_i32, %c0_i32_0 : i32, i32
  }
  func.func @transform_8(%arg0: i32) -> (i32, i32) {
    %c0_i32 = arith.constant 0 : i32
    %c0_i32_0 = arith.constant 0 : i32
    %c0_i32_1 = arith.constant 0 : i32
    return %c0_i32, %c0_i32_0 : i32, i32
  }
  func.func @transform_9(%arg0: i32) -> (i32, i32) {
    %c0_i32 = arith.constant 0 : i32
    %c0_i32_0 = arith.constant 0 : i32
    return %arg0, %c0_i32 : i32, i32
  }
}

</mosaic_0001>

<bundles_post_ra>
// kernel: mlp_forward.1
= control target key start
LH: loop header
LB: loop body
LE: loop exit
PB: predicated region body
PF: predicated region fallthrough
CT: control target
= control target key end

     0   :  { %14 = vsyncpa [#allocation3], 0  ;;  %s1875_s0 = inlined_call_operand.hbm [shape: f32[8,1024], index: 0, kind: input, shape index: {}]   ;;  %s1876_s1 = inlined_call_operand.hbm [shape: bf16[1024,128], index: 1, kind: input, shape index: {}]   ;;  %s1877_s2 = inlined_call_operand.hbm [shape: f32[1,128], index: 2, kind: input, shape index: {}]   ;;  %s1878_s3 = inlined_call_operand.hbm [shape: f32[1,128], index: 3, kind: input, shape index: {}]   ;;  %s1879_s4 = inlined_call_operand.hbm [shape: bf16[128,128], index: 4, kind: input, shape index: {}]   ;;  %s1880_s5 = inlined_call_operand.hbm [shape: f32[1,128], index: 5, kind: input, shape index: {}]   ;;  %s1881_s6 = inlined_call_operand.hbm [shape: f32[1,128], index: 6, kind: input, shape index: {}]   ;;  %s1882_s7 = inlined_call_operand.hbm [shape: bf16[128,128], index: 7, kind: input, shape index: {}]   ;;  %s1883_s8 = inlined_call_operand.hbm [shape: f32[1,128], index: 8, kind: input, shape index: {}]   ;;  %s1884_s9 = inlined_call_operand.hbm [shape: f32[8,128], index: 9, kind: output, shape index: {}]  }
   0x1   :  { %15 = vsyncpa [#allocation6], 0 }
   0x2   :  { %16 = vsyncpa [#allocation9], 0 }
   0x3   :  { %17 = vsyncpa [#allocation12], 0 }
   0x4   :  { %18 = vsyncpa [#allocation15], 0 }
   0x5   :  { %19 = vsyncpa [#allocation4], 0  ;;  %s1664_s30 = smov [#allocation5]   ;;  %s1432_s13 = scalar_lea.hbm %s1876_s1, 8192 }
   0x6   :  { %s35_s10 = sshll.u32 %s1664_s30, 4  ;;  %p1433_p0 = scmp.ne.s32.totalorder %s1876_s1, %s1432_s13  ;;  %s36_s10 = int_to_ptr.vmem [resolvable:$true] %s35_s10 }
   0x7   :  { %p1436_p1 = scmp.lt.u32.totalorder %s1432_s13, %s1876_s1 }
   0x9   :  { %p1438_p2 = pnand %p1436_p1, %p1433_p0 }
   0xb   :  { %1441 = shalt.err (!%p1438_p2)
}
   0xc   :  { %s1442_s18 = scalar_lea.vmem %s36_s10, 8192  ;;  %p1447_p4 = scmp.lt.s32.totalorder %s36_s10, %s36_s10 }
   0xd   :  { %p1443_p3 = scmp.ne.s32.totalorder %s36_s10, %s1442_s18  ;;  %p1448_p5 = scmp.lt.s32.totalorder %s1442_s18, %s1442_s18 }
   0xf   :  { %p1449_p6 = por %p1448_p5, %p1447_p4 }
  0x11   :  { %p1450_p7 = pnand %p1449_p6, %p1443_p3 }
  0x13   :  { %1453 = shalt.err (!%p1450_p7)
}
  0x14   :  { %s1665_s19 = smov 64   ;;  %s1666_s20 = smov 4  }
  0x15   :  { %41 = dma.hbm_to_vmem [thread:$0]  %s1876_s1, 8192, %s36_s10, [#allocation6], %s1665_s19, %s1665_s19, %s1666_s20  }
  0x16   :  { %s1667_s23 = smov [#allocation8]   ;;  %s1668_s25 = smov [#allocation11]  }
  0x17   :  { %s58_s24 = sshll.u32 %s1667_s23, 4  ;;  %s80_s26 = sshll.u32 %s1668_s25, 4  ;;  %s59_s24 = int_to_ptr.vmem [resolvable:$true] %s58_s24  ;;  %s81_s26 = int_to_ptr.vmem [resolvable:$true] %s80_s26 }
  0x18   :  { %s1454_s29 = scalar_lea.hbm %s1878_s3, 16 }
  0x19   :  { %p1455_p8 = scmp.ne.s32.totalorder %s1878_s3, %s1454_s29  ;;  %p1458_p9 = scmp.lt.u32.totalorder %s1454_s29, %s1878_s3 }
  0x1b   :  { %p1460_p10 = pnand %p1458_p9, %p1455_p8 }
  0x1d   :  { %1463 = shalt.err (!%p1460_p10)
}
  0x1e   :  { %s1464_s1 = scalar_lea.vmem %s59_s24, 16  ;;  %s1468_s10 = scalar_lea.vmem %s59_s24, 32 }
  0x1f   :  { %p1465_p11 = scmp.ne.s32.totalorder %s59_s24, %s1464_s1  ;;  %p1469_p12 = scmp.lt.s32.totalorder %s59_s24, %s59_s24 }
  0x20   :  { %p1470_p13 = scmp.lt.s32.totalorder %s1468_s10, %s1464_s1 }
  0x22   :  { %p1471_p0 = por %p1470_p13, %p1469_p12 }
  0x24   :  { %p1472_p1 = pnand %p1471_p0, %p1465_p11 }
  0x26   :  { %1475 = shalt.err (!%p1472_p1)
}
  0x27   :  { %61 = dma.hbm_to_vmem [thread:$0]  %s1878_s3, 16, %s59_s24, [#allocation9]  }
  0x28   :  { %s1476_s18 = scalar_lea.hbm %s1880_s5, 16 }
  0x29   :  { %p1477_p2 = scmp.ne.s32.totalorder %s1880_s5, %s1476_s18  ;;  %p1480_p3 = scmp.lt.u32.totalorder %s1476_s18, %s1880_s5 }
  0x2b   :  { %p1482_p4 = pnand %p1480_p3, %p1477_p2 }
  0x2d   :  { %1485 = shalt.err (!%p1482_p4)
}
  0x2e   :  { %s1486_s27 = scalar_lea.vmem %s81_s26, 16  ;;  %s1490_s28 = scalar_lea.vmem %s81_s26, 32 }
  0x2f   :  { %p1487_p5 = scmp.ne.s32.totalorder %s81_s26, %s1486_s27  ;;  %p1491_p6 = scmp.lt.s32.totalorder %s81_s26, %s81_s26 }
  0x30   :  { %p1492_p7 = scmp.lt.s32.totalorder %s1490_s28, %s1486_s27 }
  0x32   :  { %p1493_p8 = por %p1492_p7, %p1491_p6 }
  0x34   :  { %p1494_p9 = pnand %p1493_p8, %p1487_p5 }
  0x36   :  { %1497 = shalt.err (!%p1494_p9)
}
  0x37   :  { %83 = dma.hbm_to_vmem [thread:$0]  %s1880_s5, 16, %s81_s26, [#allocation12]  }
  0x38   :  { %s1669_s29 = smov [#allocation14]   ;;  %s1670_s11 = smov [#allocation2]  }
  0x39   :  { %s99_s30 = sshll.u32 %s1669_s29, 4  ;;  %s26_s12 = sshll.u32 %s1670_s11, 4  ;;  %s100_s30 = int_to_ptr.vmem [resolvable:$true] %s99_s30  ;;  %s27_s12 = int_to_ptr.vmem [resolvable:$true] %s26_s12 }
  0x3a   :  { %s1498_s10 = scalar_lea.hbm %s1882_s7, 1024 }
  0x3b   :  { %p1499_p10 = scmp.ne.s32.totalorder %s1882_s7, %s1498_s10  ;;  %p1502_p11 = scmp.lt.u32.totalorder %s1498_s10, %s1882_s7 }
  0x3d   :  { %p1504_p12 = pnand %p1502_p11, %p1499_p10 }
  0x3f   :  { %1507 = shalt.err (!%p1504_p12)
}
  0x40   :  { %s1508_s5 = scalar_lea.vmem %s100_s30, 1024  ;;  %p1513_p0 = scmp.lt.s32.totalorder %s100_s30, %s100_s30 }
  0x41   :  { %p1509_p13 = scmp.ne.s32.totalorder %s100_s30, %s1508_s5  ;;  %p1514_p1 = scmp.lt.s32.totalorder %s1508_s5, %s1508_s5 }
  0x43   :  { %p1515_p2 = por %p1514_p1, %p1513_p0 }
  0x45   :  { %p1516_p3 = pnand %p1515_p2, %p1509_p13 }
  0x47   :  { %1519 = shalt.err (!%p1516_p3)
}
  0x48   :  { %105 = dma.hbm_to_vmem [thread:$0]  %s1882_s7, 1024, %s100_s30, [#allocation15], %s1665_s19, %s1665_s19, %s1666_s20  }
  0x49   :  { %s1520_s23 = scalar_lea.hbm %s1875_s0, 1024 }
  0x4a   :  { %p1521_p4 = scmp.ne.s32.totalorder %s1875_s0, %s1520_s23  ;;  %p1524_p5 = scmp.lt.u32.totalorder %s1520_s23, %s1875_s0 }
  0x4c   :  { %p1526_p6 = pnand %p1524_p5, %p1521_p4 }
  0x4e   :  { %1529 = shalt.err (!%p1526_p6)
}
  0x4f   :  { %s1530_s24 = scalar_lea.vmem %s27_s12, 1024  ;;  %p1535_p8 = scmp.lt.s32.totalorder %s27_s12, %s27_s12 }
  0x50   :  { %p1531_p7 = scmp.ne.s32.totalorder %s27_s12, %s1530_s24  ;;  %p1536_p9 = scmp.lt.s32.totalorder %s1530_s24, %s1530_s24 }
  0x52   :  { %p1537_p10 = por %p1536_p9, %p1535_p8 }
  0x54   :  { %p1538_p11 = pnand %p1537_p10, %p1531_p7 }
  0x56   :  { %1541 = shalt.err (!%p1538_p11)
}
  0x57   :  { %29 = dma.hbm_to_vmem [thread:$0]  %s1875_s0, 1024, %s27_s12, [#allocation3]  }
  0x58   :  { %s1671_s30 = smov [#allocation7]   ;;  %s1672_s13 = smov [#allocation10]  }
  0x59   :  { %s48_s11 = sshll.u32 %s1671_s30, 4  ;;  %s67_s1 = sshll.u32 %s1672_s13, 4  ;;  %s49_s11 = int_to_ptr.vmem [resolvable:$true] %s48_s11  ;;  %s68_s1 = int_to_ptr.vmem [resolvable:$true] %s67_s1 }
  0x5a   :  { %s1542_s15 = scalar_lea.hbm %s1877_s2, 16 }
  0x5b   :  { %p1543_p12 = scmp.ne.s32.totalorder %s1877_s2, %s1542_s15  ;;  %p1546_p13 = scmp.lt.u32.totalorder %s1542_s15, %s1877_s2 }
  0x5d   :  { %p1548_p0 = pnand %p1546_p13, %p1543_p12 }
  0x5f   :  { %1551 = shalt.err (!%p1548_p0)
}
  0x60   :  { %s1552_s0 = scalar_lea.vmem %s49_s11, 16  ;;  %s1556_s12 = scalar_lea.vmem %s49_s11, 32 }
  0x61   :  { %p1553_p1 = scmp.ne.s32.totalorder %s49_s11, %s1552_s0  ;;  %p1557_p2 = scmp.lt.s32.totalorder %s49_s11, %s49_s11 }
  0x62   :  { %p1558_p3 = scmp.lt.s32.totalorder %s1556_s12, %s1552_s0 }
  0x64   :  { %p1559_p4 = por %p1558_p3, %p1557_p2 }
  0x66   :  { %p1560_p5 = pnand %p1559_p4, %p1553_p1 }
  0x68   :  { %1563 = shalt.err (!%p1560_p5)
}
  0x69   :  { %51 = dma.hbm_to_vmem [thread:$0]  %s1877_s2, 16, %s49_s11, [#allocation6]  }
  0x6a   :  { %s1564_s25 = scalar_lea.hbm %s1879_s4, 1024 }
  0x6b   :  { %p1565_p6 = scmp.ne.s32.totalorder %s1879_s4, %s1564_s25  ;;  %p1568_p7 = scmp.lt.u32.totalorder %s1564_s25, %s1879_s4 }
  0x6d   :  { %p1570_p8 = pnand %p1568_p7, %p1565_p6 }
  0x6f   :  { %1573 = shalt.err (!%p1570_p8)
}
  0x70   :  { %s1574_s7 = scalar_lea.vmem %s68_s1, 1024  ;;  %p1579_p10 = scmp.lt.s32.totalorder %s68_s1, %s68_s1 }
  0x71   :  { %p1575_p9 = scmp.ne.s32.totalorder %s68_s1, %s1574_s7  ;;  %p1580_p11 = scmp.lt.s32.totalorder %s1574_s7, %s1574_s7 }
  0x73   :  { %p1581_p12 = por %p1580_p11, %p1579_p10 }
  0x75   :  { %p1582_p13 = pnand %p1581_p12, %p1575_p9 }
  0x77   :  { %1585 = shalt.err (!%p1582_p13)
}
  0x78   :  { %73 = dma.hbm_to_vmem [thread:$0]  %s1879_s4, 1024, %s68_s1, [#allocation9], %s1665_s19, %s1665_s19, %s1666_s20  }
  0x79   :  { %s1673_s30 = smov [#allocation13]   ;;  %s1674_s13 = smov [#allocation16]  }
  0x7a   :  { %s90_s11 = sshll.u32 %s1673_s30, 4  ;;  %s112_s10 = sshll.u32 %s1674_s13, 4  ;;  %s91_s11 = int_to_ptr.vmem [resolvable:$true] %s90_s11  ;;  %s113_s10 = int_to_ptr.vmem [resolvable:$true] %s112_s10 }
  0x7b   :  { %s1586_s16 = scalar_lea.hbm %s1881_s6, 16 }
  0x7c   :  { %p1587_p0 = scmp.ne.s32.totalorder %s1881_s6, %s1586_s16  ;;  %p1590_p1 = scmp.lt.u32.totalorder %s1586_s16, %s1881_s6 }
  0x7e   :  { %p1592_p2 = pnand %p1590_p1, %p1587_p0 }
  0x80   :  { %1595 = shalt.err (!%p1592_p2)
}
  0x81   :  { %s1596_s4 = scalar_lea.vmem %s91_s11, 16  ;;  %s1600_s19 = scalar_lea.vmem %s91_s11, 32 }
  0x82   :  { %p1597_p3 = scmp.ne.s32.totalorder %s91_s11, %s1596_s4  ;;  %p1601_p4 = scmp.lt.s32.totalorder %s91_s11, %s91_s11 }
  0x83   :  { %p1602_p5 = scmp.lt.s32.totalorder %s1600_s19, %s1596_s4 }
  0x85   :  { %p1603_p6 = por %p1602_p5, %p1601_p4 }
  0x87   :  { %p1604_p7 = pnand %p1603_p6, %p1597_p3 }
  0x89   :  { %1607 = shalt.err (!%p1604_p7)
}
  0x8a   :  { %93 = dma.hbm_to_vmem [thread:$0]  %s1881_s6, 16, %s91_s11, [#allocation12]  }
  0x8b   :  { %s1608_s21 = scalar_lea.hbm %s1883_s8, 16 }
  0x8c   :  { %p1609_p8 = scmp.ne.s32.totalorder %s1883_s8, %s1608_s21  ;;  %p1612_p9 = scmp.lt.u32.totalorder %s1608_s21, %s1883_s8 }
  0x8e   :  { %p1614_p10 = pnand %p1612_p9, %p1609_p8 }
  0x90   :  { %1617 = shalt.err (!%p1614_p10)
}
  0x91   :  { %s1618_s28 = scalar_lea.vmem %s113_s10, 16  ;;  %s1622_s3 = scalar_lea.vmem %s113_s10, 32 }
  0x92   :  { %p1619_p11 = scmp.ne.s32.totalorder %s113_s10, %s1618_s28  ;;  %p1623_p12 = scmp.lt.s32.totalorder %s113_s10, %s113_s10 }
  0x93   :  { %p1624_p13 = scmp.lt.s32.totalorder %s1622_s3, %s1618_s28 }
  0x95   :  { %p1625_p0 = por %p1624_p13, %p1623_p12 }
  0x97   :  { %p1626_p1 = pnand %p1625_p0, %p1619_p11 }
  0x99   :  { %1629 = shalt.err (!%p1626_p1)
}
  0x9a   :  { %115 = dma.hbm_to_vmem [thread:$0]  %s1883_s8, 16, %s113_s10, [#allocation15]  }
  0x9b   :  { %1652 = dma.done.wait [#allocation3], 1024  }
  0x9c   :  { %1653 = vsyncadd [#allocation3], 4294966272 }
  0x9d   :  { %1654 = dma.done.wait [#allocation6], 8208  }
  0x9e   :  { %1655 = vsyncadd [#allocation6], 4294959088 }
  0x9f   :  { %1656 = dma.done.wait [#allocation9], 1040  }
  0xa0   :  { %1657 = vsyncadd [#allocation9], 4294966256 }
  0xa1   :  { %1658 = dma.done.wait [#allocation12], 32  }
  0xa2   :  { %1659 = vsyncadd [#allocation12], 4294967264 }
  0xa3   :  { %1660 = dma.done.wait [#allocation15], 1040  }
  0xa4   :  { %1661 = vsyncadd [#allocation15], 4294966256  ;;  %v1352_v0 = vld [vmem:[#allocation5 + $0x40] sm:$0xff]   ;;  %v1356_v4 = vld [vmem:[#allocation5 + $0x48] sm:$0xff]   ;;  %vm1676_vm0 = vmmov 0   ;;  %s1677_s8 = smov [#allocation17]  }
  0xa5   :  { %v1353_v1 = vld [vmem:[#allocation5 + $0xc0] sm:$0xff]   ;;  %1192 = vmatprep.subr.bf16.mxu0 %v1352_v0  ;;  %v1357_v5 = vld [vmem:[#allocation5 + $0xc8] sm:$0xff]   ;;  %v1360_v8 = vld [vmem:[#allocation5 + $0x50] sm:$0xff]   ;;  %s1094_s7 = sshll.u32 %s1677_s8, 4  ;;  %s1095_s7 = int_to_ptr.vmem [resolvable:$true] %s1094_s7 }
  0xa6   :  { %v1354_v2 = vld [vmem:[#allocation5] sm:$0xff]   ;;  %1214 = vmatprep.subr.bf16.mxu1 %v1353_v1  ;;  %v1358_v6 = vld [vmem:[#allocation5 + $0x8] sm:$0xff]   ;;  %v1361_v9 = vld [vmem:[#allocation5 + $0xd0] sm:$0xff]   ;;  %s1630_s2 = scalar_lea.vmem %s1095_s7, 128  ;;  %p1635_p3 = scmp.lt.s32.totalorder %s1095_s7, %s1095_s7 }
  0xa7   :  { %v1355_v3 = vld [vmem:[#allocation5 + $0x80] sm:$0xff]   ;;  %1193 = vmatpush3.bf16.msra.mxu0 %v1354_v2  ;;  %v1359_v7 = vld [vmem:[#allocation5 + $0x88] sm:$0xff]   ;;  %v1362_v10 = vld [vmem:[#allocation5 + $0x10] sm:$0xff]   ;;  %p1631_p2 = scmp.ne.s32.totalorder %s1095_s7, %s1630_s2  ;;  %p1636_p4 = scmp.lt.s32.totalorder %s1630_s2, %s1630_s2 }
  0xa8   :  { %1215 = vmatpush3.bf16.msra.mxu1 %v1355_v3  ;;  %1194 = vmatprep.subr.bf16.mxu0 %v1356_v4  ;;  %v1363_v11 = vld [vmem:[#allocation5 + $0x90] sm:$0xff]   ;;  %v1364_v12 = vld [vmem:[#allocation5 + $0x58] sm:$0xff]   ;;  %v1368_v16 = vld [vmem:[#allocation5 + $0x60] sm:$0xff]  }
  0xa9   :  { %1216 = vmatprep.subr.bf16.mxu1 %v1357_v5  ;;  %v1365_v13 = vld [vmem:[#allocation5 + $0xd8] sm:$0xff]   ;;  %v1369_v17 = vld [vmem:[#allocation5 + $0xe0] sm:$0xff]   ;;  %v1372_v20 = vld [vmem:[#allocation5 + $0x68] sm:$0xff]   ;;  %p1637_p5 = por %p1636_p4, %p1635_p3 }
  0xaa   :  { %v1366_v14 = vld [vmem:[#allocation5 + $0x18] sm:$0xff]   ;;  %v1370_v18 = vld [vmem:[#allocation5 + $0x20] sm:$0xff]   ;;  %v1373_v21 = vld [vmem:[#allocation5 + $0xe8] sm:$0xff]  }
  0xab   :  { %1195 = vmatpush3.bf16.msra.mxu0 %v1358_v6  ;;  %v1367_v15 = vld [vmem:[#allocation5 + $0x98] sm:$0xff]   ;;  %v1371_v19 = vld [vmem:[#allocation5 + $0xa0] sm:$0xff]   ;;  %v1374_v22 = vld [vmem:[#allocation5 + $0x28] sm:$0xff]   ;;  %p1638_p6 = pnand %p1637_p5, %p1631_p2 }
  0xac   :  { %1217 = vmatpush3.bf16.msra.mxu1 %v1359_v7  ;;  %1196 = vmatprep.subr.bf16.mxu0 %v1360_v8  ;;  %v1375_v23 = vld [vmem:[#allocation5 + $0xa8] sm:$0xff]   ;;  %v1376_v24 = vld [vmem:[#allocation5 + $0x70] sm:$0xff]   ;;  %v1380_v28 = vld [vmem:[#allocation5 + $0x78] sm:$0xff]  }
  0xad   :  { %1218 = vmatprep.subr.bf16.mxu1 %v1361_v9  ;;  %v1377_v25 = vld [vmem:[#allocation5 + $0xf0] sm:$0xff]   ;;  %v1381_v29 = vld [vmem:[#allocation5 + $0xf8] sm:$0xff]   ;;  %v145_v32 = vld [vmem:[#allocation2 + $0x8] sm:$0xff] }
  0xae   :  { %v1378_v26 = vld [vmem:[#allocation5 + $0x30] sm:$0xff]   ;;  %v1382_v30 = vld [vmem:[#allocation5 + $0x38] sm:$0xff]   ;;  %v144_v34 = vld [vmem:[#allocation2] sm:$0xff]  ;;  %v153_v35 = vpack.c.bf16 %v145_v32, %v145_v32 }
  0xaf   :  { %1197 = vmatpush3.bf16.msra.mxu0 %v1362_v10  ;;  %v1379_v27 = vld [vmem:[#allocation5 + $0xb0] sm:$0xff]   ;;  %v1383_v31 = vld [vmem:[#allocation5 + $0xb8] sm:$0xff]   ;;  %v152_v37 = vpack.c.bf16 %v144_v34, %v144_v34  ;;  %v1384_v40 = vld [vmem:[#allocation5 + $0x140] sm:$0xff]  }
  0xb0   :  { %1219 = vmatpush3.bf16.msra.mxu1 %v1363_v11  ;;  %1198 = vmatprep.subr.bf16.mxu0 %v1364_v12  ;;  %v147_v33 = vld [vmem:[#allocation2 + $0x18] sm:$0xff]  ;;  %v146_v38 = vld [vmem:[#allocation2 + $0x10] sm:$0xff]  ;;  %v1385_v41 = vld [vmem:[#allocation5 + $0x1c0] sm:$0xff]  }
  0xb1   :  { %1220 = vmatprep.subr.bf16.mxu1 %v1365_v13  ;;  %v155_v36 = vpack.c.bf16 %v147_v33, %v147_v33  ;;  %v154_v39 = vpack.c.bf16 %v146_v38, %v146_v38  ;;  %704 = vmatprep.mubr.bf16.mxu0 %v153_v35  ;;  %v1386_v42 = vld [vmem:[#allocation5 + $0x100] sm:$0xff]   ;;  %v1388_v44 = vld [vmem:[#allocation5 + $0x148] sm:$0xff]   ;;  %v1392_v48 = vld [vmem:[#allocation5 + $0x150] sm:$0xff]  }
  0xb2   :  { %v1387_v43 = vld [vmem:[#allocation5 + $0x180] sm:$0xff]   ;;  %v1389_v45 = vld [vmem:[#allocation5 + $0x1c8] sm:$0xff]   ;;  %v1393_v49 = vld [vmem:[#allocation5 + $0x1d0] sm:$0xff]  }
  0xb3   :  { %1199 = vmatpush3.bf16.msra.mxu0 %v1366_v14  ;;  %744 = vmatprep.mubr.bf16.mxu1 %v155_v36  ;;  %v1390_v46 = vld [vmem:[#allocation5 + $0x108] sm:$0xff]   ;;  %v1394_v50 = vld [vmem:[#allocation5 + $0x110] sm:$0xff]   ;;  %v1396_v52 = vld [vmem:[#allocation5 + $0x158] sm:$0xff]  }
  0xb4   :  { %1221 = vmatpush3.bf16.msra.mxu1 %v1367_v15  ;;  %1200 = vmatprep.subr.bf16.mxu0 %v1368_v16  ;;  %v1391_v47 = vld [vmem:[#allocation5 + $0x188] sm:$0xff]   ;;  %v1395_v51 = vld [vmem:[#allocation5 + $0x190] sm:$0xff]   ;;  %v1397_v53 = vld [vmem:[#allocation5 + $0x1d8] sm:$0xff]  }
  0xb5   :  { %1222 = vmatprep.subr.bf16.mxu1 %v1369_v17  ;;  %v1398_v54 = vld [vmem:[#allocation5 + $0x118] sm:$0xff]   ;;  %v1400_v56 = vld [vmem:[#allocation5 + $0x160] sm:$0xff]   ;;  %v1404_v60 = vld [vmem:[#allocation5 + $0x168] sm:$0xff]   ;;  %v1675_v17 = vmov 0.0  }
  0xb6   :  { %v1399_v55 = vld [vmem:[#allocation5 + $0x198] sm:$0xff]   ;;  %v1401_v57 = vld [vmem:[#allocation5 + $0x1e0] sm:$0xff]   ;;  %v1405_v61 = vld [vmem:[#allocation5 + $0x1e8] sm:$0xff]  }
  0xb7   :  { %1201 = vmatpush3.bf16.msra.mxu0 %v1370_v18  ;;  %v1402_v58 = vld [vmem:[#allocation5 + $0x120] sm:$0xff]   ;;  %v1406_v62 = vld [vmem:[#allocation5 + $0x128] sm:$0xff]   ;;  %v1408_v0 = vld [vmem:[#allocation5 + $0x170] sm:$0xff]  }
  0xb8   :  { %1223 = vmatpush3.bf16.msra.mxu1 %v1371_v19  ;;  %1202 = vmatprep.subr.bf16.mxu0 %v1372_v20  ;;  %v1403_v59 = vld [vmem:[#allocation5 + $0x1a0] sm:$0xff]   ;;  %v1407_v63 = vld [vmem:[#allocation5 + $0x1a8] sm:$0xff]   ;;  %v1409_v1 = vld [vmem:[#allocation5 + $0x1f0] sm:$0xff]  }
  0xb9   :  { %1224 = vmatprep.subr.bf16.mxu1 %v1373_v21  ;;  %v1410_v2 = vld [vmem:[#allocation5 + $0x130] sm:$0xff]   ;;  %v1412_v4 = vld [vmem:[#allocation5 + $0x178] sm:$0xff]   ;;  %v149_v8 = vld [vmem:[#allocation2 + $0x28] sm:$0xff] }
  0xba   :  { %v1411_v3 = vld [vmem:[#allocation5 + $0x1b0] sm:$0xff]   ;;  %v1413_v5 = vld [vmem:[#allocation5 + $0x1f8] sm:$0xff]   ;;  %v157_v10 = vpack.c.bf16 %v149_v8, %v149_v8  ;;  %v148_v12 = vld [vmem:[#allocation2 + $0x20] sm:$0xff] }
  0xbb   :  { %1203 = vmatpush3.bf16.msra.mxu0 %v1374_v22  ;;  %v1414_v6 = vld [vmem:[#allocation5 + $0x138] sm:$0xff]   ;;  %v150_v13 = vld [vmem:[#allocation2 + $0x30] sm:$0xff]  ;;  %v156_v14 = vpack.c.bf16 %v148_v12, %v148_v12  ;;  %v1416_v16 = vld [vmem:[#allocation10] sm:$0xff]  }
  0xbc   :  { %1225 = vmatpush3.bf16.msra.mxu1 %v1375_v23  ;;  %1204 = vmatprep.subr.bf16.mxu0 %v1376_v24  ;;  %v1415_v7 = vld [vmem:[#allocation5 + $0x1b8] sm:$0xff]   ;;  %v158_v15 = vpack.c.bf16 %v150_v13, %v150_v13  ;;  %v1417_v18 = vld [vmem:[#allocation10 + $0x8] sm:$0xff]   ;;  %v1420_v21 = vld [vmem:[#allocation10 + $0x20] sm:$0xff]  }
  0xbd   :  { %1226 = vmatprep.subr.bf16.mxu1 %v1377_v25  ;;  %v151_v9 = vld [vmem:[#allocation2 + $0x38] sm:$0xff]  ;;  %v1421_v22 = vld [vmem:[#allocation10 + $0x28] sm:$0xff]  }
  0xbe   :  { %v159_v11 = vpack.c.bf16 %v151_v9, %v151_v9  ;;  %v1418_v19 = vld [vmem:[#allocation10 + $0x10] sm:$0xff]   ;;  %v1419_v20 = vld [vmem:[#allocation10 + $0x18] sm:$0xff]   ;;  %v1424_v25 = vld [vmem:[#allocation14] sm:$0xff]  }
  0xbf   :  { %1205 = vmatpush3.bf16.msra.mxu0 %v1378_v26  ;;  %v1422_v23 = vld [vmem:[#allocation10 + $0x30] sm:$0xff]   ;;  %v1423_v24 = vld [vmem:[#allocation10 + $0x38] sm:$0xff]  }
  0xc0   :  { %1227 = vmatpush3.bf16.msra.mxu1 %v1379_v27  ;;  %1206 = vmatprep.subr.bf16.mxu0 %v1380_v28  ;;  %v1425_v26 = vld [vmem:[#allocation14 + $0x8] sm:$0xff]   ;;  %v1426_v27 = vld [vmem:[#allocation14 + $0x10] sm:$0xff]   ;;  %v1427_v28 = vld [vmem:[#allocation14 + $0x18] sm:$0xff]  }
  0xc1   :  { %1228 = vmatprep.subr.bf16.mxu1 %v1381_v29  ;;  %v1428_v29 = vld [vmem:[#allocation14 + $0x20] sm:$0xff]  }
  0xc3   :  { %1207 = vmatpush3.bf16.msra.mxu0 %v1382_v30  ;;  %v1429_v30 = vld [vmem:[#allocation14 + $0x28] sm:$0xff]  }
  0xc4   :  { %1229 = vmatpush3.bf16.msra.mxu1 %v1383_v31  ;;  %1236 = vmatprep.subr.bf16.mxu0 %v1384_v40 }
  0xc5   :  { %1258 = vmatprep.subr.bf16.mxu1 %v1385_v41 }
  0xc6   :  { %705 = vmatmul.mubr.bf16.vlgmr.msra.gmra.mrb[0].mxu0 %v152_v37 }
  0xc7   :  { %745 = vmatmul.mubr.bf16.vlgmr.msra.gmra.mrb[0].mxu1 %v154_v39  ;;  %1237 = vmatpush3.bf16.msra.mxu0 %v1386_v42 }
  0xc8   :  { %1259 = vmatpush3.bf16.msra.mxu1 %v1387_v43  ;;  %1238 = vmatprep.subr.bf16.mxu0 %v1388_v44 }
  0xc9   :  { %1260 = vmatprep.subr.bf16.mxu1 %v1389_v45  ;;  %784 = vmatprep.mubr.bf16.mxu0 %v157_v10  ;;  %v1183_v10 = vld [vmem:[#allocation16] ss:$0 sm:$0xff] }
  0xca   :  { %824 = vmatprep.mubr.bf16.mxu1 %v159_v11 }
  0xcb   :  { %1239 = vmatpush3.bf16.msra.mxu0 %v1390_v46 }
  0xcc   :  { %1261 = vmatpush3.bf16.msra.mxu1 %v1391_v47  ;;  %1240 = vmatprep.subr.bf16.mxu0 %v1392_v48 }
  0xcd   :  { %1262 = vmatprep.subr.bf16.mxu1 %v1393_v49 }
  0xcf   :  { %1241 = vmatpush3.bf16.msra.mxu0 %v1394_v50 }
  0xd0   :  { %1263 = vmatpush3.bf16.msra.mxu1 %v1395_v51  ;;  %1242 = vmatprep.subr.bf16.mxu0 %v1396_v52 }
  0xd1   :  { %1264 = vmatprep.subr.bf16.mxu1 %v1397_v53  ;;  %v1171_v53 = vld [vmem:[#allocation7] ss:$0 sm:$0xff] }
  0xd3   :  { %1243 = vmatpush3.bf16.msra.mxu0 %v1398_v54 }
  0xd4   :  { %1265 = vmatpush3.bf16.msra.mxu1 %v1399_v55  ;;  %1244 = vmatprep.subr.bf16.mxu0 %v1400_v56  ;;  %v1172_v55 = vld [vmem:[#allocation8] ss:$0 sm:$0xff] }
  0xd5   :  { %1266 = vmatprep.subr.bf16.mxu1 %v1401_v57 }
  0xd7   :  { %1245 = vmatpush3.bf16.msra.mxu0 %v1402_v58 }
  0xd8   :  { %1267 = vmatpush3.bf16.msra.mxu1 %v1403_v59  ;;  %1246 = vmatprep.subr.bf16.mxu0 %v1404_v60 }
  0xd9   :  { %1268 = vmatprep.subr.bf16.mxu1 %v1405_v61  ;;  %v1430_v61 = vld [vmem:[#allocation14 + $0x30] sm:$0xff]  }
  0xdb   :  { %1247 = vmatpush3.bf16.msra.mxu0 %v1406_v62  ;;  %v1431_v62 = vld [vmem:[#allocation14 + $0x38] sm:$0xff]  }
  0xdc   :  { %1269 = vmatpush3.bf16.msra.mxu1 %v1407_v63  ;;  %1248 = vmatprep.subr.bf16.mxu0 %v1408_v0  ;;  %v1181_v63 = vld [vmem:[#allocation11] ss:$0 sm:$0xff] }
  0xdd   :  { %1270 = vmatprep.subr.bf16.mxu1 %v1409_v1  ;;  %v1182_v1 = vld [vmem:[#allocation13] ss:$0 sm:$0xff] }
  0xdf   :  { %1249 = vmatpush3.bf16.msra.mxu0 %v1410_v2 }
  0xe0   :  { %1271 = vmatpush3.bf16.msra.mxu1 %v1411_v3  ;;  %1250 = vmatprep.subr.bf16.mxu0 %v1412_v4 }
  0xe1   :  { %1272 = vmatprep.subr.bf16.mxu1 %v1413_v5 }
  0xe3   :  { %1251 = vmatpush3.bf16.msra.mxu0 %v1414_v6 }
  0xe4   :  { %1273 = vmatpush3.bf16.msra.mxu1 %v1415_v7  ;;  %1298 = vmatprep.subr.bf16.mxu0 %v1675_v17 }
  0xe5   :  { %1318 = vmatprep.subr.bf16.mxu1 %v1675_v17 }
  0xe6   :  { %785 = vmatmul.mubr.bf16.vlgmr.msra.gmra.mrb[4].mxu0 %v156_v14 }
  0xe7   :  { %825 = vmatmul.mubr.bf16.vlgmr.msra.gmra.mrb[4].mxu1 %v158_v15  ;;  %1299 = vmatpush3.bf16.msra.mxu0 %v1416_v16 }
  0xe8   :  { %1300 = vmatprep.subr.bf16.mxu0 %v1675_v17  ;;  %1314 = vmatprep.mubr.msk.bf16.mxu0 %vm1676_vm0, %v1675_v17 }
  0xe9   :  { %1334 = vmatprep.mubr.msk.bf16.mxu1 %vm1676_vm0, %v1675_v17  ;;  %1319 = vmatpush3.bf16.msra.mxu1 %v1424_v25 }
  0xea   :  { %1320 = vmatprep.subr.bf16.mxu1 %v1675_v17 }
  0xeb   :  { %1301 = vmatpush3.bf16.msra.mxu0 %v1417_v18 }
  0xec   :  { %1302 = vmatprep.subr.bf16.mxu0 %v1675_v17 }
  0xed   :  { %1321 = vmatpush3.bf16.msra.mxu1 %v1425_v26 }
  0xee   :  { %1322 = vmatprep.subr.bf16.mxu1 %v1675_v17 }
  0xef   :  { %1303 = vmatpush3.bf16.msra.mxu0 %v1418_v19 }
  0xf0   :  { %1304 = vmatprep.subr.bf16.mxu0 %v1675_v17 }
  0xf1   :  { %1323 = vmatpush3.bf16.msra.mxu1 %v1426_v27 }
  0xf2   :  { %1324 = vmatprep.subr.bf16.mxu1 %v1675_v17 }
  0xf3   :  { %1305 = vmatpush3.bf16.msra.mxu0 %v1419_v20 }
  0xf4   :  { %1306 = vmatprep.subr.bf16.mxu0 %v1675_v17 }
  0xf5   :  { %1325 = vmatpush3.bf16.msra.mxu1 %v1427_v28 }
  0xf6   :  { %1326 = vmatprep.subr.bf16.mxu1 %v1675_v17 }
  0xf7   :  { %1307 = vmatpush3.bf16.msra.mxu0 %v1420_v21 }
  0xf8   :  { %1308 = vmatprep.subr.bf16.mxu0 %v1675_v17 }
  0xf9   :  { %1327 = vmatpush3.bf16.msra.mxu1 %v1428_v29 }
  0xfa   :  { %1328 = vmatprep.subr.bf16.mxu1 %v1675_v17 }
  0xfb   :  { %1309 = vmatpush3.bf16.msra.mxu0 %v1421_v22 }
  0xfc   :  { %1310 = vmatprep.subr.bf16.mxu0 %v1675_v17 }
  0xfd   :  { %1329 = vmatpush3.bf16.msra.mxu1 %v1429_v30 }
  0xfe   :  { %1330 = vmatprep.subr.bf16.mxu1 %v1675_v17 }
  0xff   :  { %1311 = vmatpush3.bf16.msra.mxu0 %v1422_v23 }
 0x100   :  { %1312 = vmatprep.subr.bf16.mxu0 %v1675_v17 }
 0x101   :  { %1331 = vmatpush3.bf16.msra.mxu1 %v1430_v61 }
 0x102   :  { %1332 = vmatprep.subr.bf16.mxu1 %v1675_v17 }
 0x103   :  { %1313 = vmatpush3.bf16.msra.mxu0 %v1423_v24 }
 0x105   :  { %1333 = vmatpush3.bf16.msra.mxu1 %v1431_v62 }
 0x199   :  { %v1208_v31 = vpop.f32.mrb[0].mxu0 }
 0x19a   :  { %v1230_v32 = vpop.f32.mrb[0].mxu1  ;;  %v1209_v33 = vpop.f32.mrb[1].mxu0 }
 0x19b   :  { %v1231_v34 = vpop.f32.mrb[1].mxu1  ;;  %v1210_v35 = vadd.f32 %v1209_v33, %v1208_v31  ;;  %v1211_v37 = vpop.f32.mrb[2].mxu0 }
 0x19c   :  { %v1232_v36 = vadd.f32 %v1231_v34, %v1230_v32  ;;  %v1233_v38 = vpop.f32.mrb[2].mxu1  ;;  %v1212_v39 = vpop.f32.mrb[3].mxu0 }
 0x19d   :  { %v1234_v40 = vpop.f32.mrb[3].mxu1 }
 0x19e   :  { %v747_v41 = vadd.f32 %v1232_v36, %v1210_v35 }
 0x1b9   :  { %v1252_v42 = vpop.f32.mrb[4].mxu0 }
 0x1ba   :  { %v1274_v43 = vpop.f32.mrb[4].mxu1  ;;  %v1253_v44 = vpop.f32.mrb[5].mxu0 }
 0x1bb   :  { %v1254_v45 = vadd.f32 %v1253_v44, %v1252_v42  ;;  %v1275_v46 = vpop.f32.mrb[5].mxu1  ;;  %v1255_v47 = vpop.f32.mrb[6].mxu0 }
 0x1bc   :  { %v1276_v48 = vadd.f32 %v1275_v46, %v1274_v43  ;;  %v1277_v49 = vpop.f32.mrb[6].mxu1  ;;  %v1256_v50 = vpop.f32.mrb[7].mxu0 }
 0x1bd   :  { %v787_v51 = vadd.f32 %v1254_v45, %v747_v41  ;;  %v1278_v52 = vpop.f32.mrb[7].mxu1 }
 0x1bf   :  { %v827_v54 = vadd.f32 %v1276_v48, %v787_v51 }
 0x1c1   :  { %v839_v56 = vmul.f32 %v1171_v53, %v827_v54 }
 0x1c3   :  { %v847_v57 = vadd.f32 %v1172_v55, %v839_v56 }
 0x1c5   :  { %v849_v58 = vmul.f32 0.01, %v847_v57  ;;  %vm848_vm1 = vcmp.ge.f32.partialorder %v847_v57, 0.0 }
 0x1c7   :  { %v850_v59 = vsel %vm848_vm1, %v847_v57, %v849_v58 }
 0x1c8   :  { %v851_v60 = vpack.c.bf16 %v850_v59, %v850_v59 }
 0x1ca   :  { %1315 = vmatmul.mubr.bf16.vlgmr.msra.gmra.mrb[8].mxu0 %v851_v60 }
 0x29d   :  { %v950_v0 = vpop.f32.mrb[8].mxu0 }
 0x29e   :  { %v963_v2 = vmul.f32 %v1181_v63, %v950_v0  ;;  %v1316_v3 = vpop.f32.mrb[9].mxu0 }
 0x29f   :  { %v953_v4 = vpop.f32.mrb[10].mxu0 }
 0x2a0   :  { %v971_v5 = vadd.f32 %v1182_v1, %v963_v2  ;;  %v1317_v6 = vpop.f32.mrb[11].mxu0 }
 0x2a2   :  { %vm972_vm2 = vcmp.ge.f32.partialorder %v971_v5, 0.0  ;;  %v973_v7 = vmul.f32 0.01, %v971_v5 }
 0x2a4   :  { %v974_v8 = vsel %vm972_vm2, %v971_v5, %v973_v7 }
 0x2a5   :  { %v975_v9 = vpack.c.bf16 %v974_v8, %v974_v8 }
 0x2a7   :  { %1335 = vmatmul.mubr.bf16.vlgmr.msra.gmra.mrb[8].mxu1 %v975_v9 }
 0x37a   :  { %v1081_v11 = vpop.f32.mrb[8].mxu1 }
 0x37b   :  { %v1082_v12 = vadd.f32 %v1183_v10, %v1081_v11  ;;  %v1336_v13 = vpop.f32.mrb[9].mxu1 }
 0x37c   :  { %v1084_v14 = vpop.f32.mrb[10].mxu1 }
 0x37d   :  { %1087 = vst [vmem:[#allocation17] sm:$0xff] %v1082_v12  ;;  %v1337_v15 = vpop.f32.mrb[11].mxu1 }
 0x37e   :  { %1641 = shalt.err (!%p1638_p6)
}
 0x37f   :  { %s1642_s11 = scalar_lea.hbm %s1884_s9, 128 }
 0x380   :  { %p1643_p7 = scmp.ne.s32.totalorder %s1884_s9, %s1642_s11  ;;  %p1646_p8 = scmp.lt.u32.totalorder %s1642_s11, %s1884_s9 }
 0x382   :  { %p1648_p9 = pnand %p1646_p8, %p1643_p7 }
 0x384   :  { %1651 = shalt.err (!%p1648_p9)
}
 0x385   :  { %1097 = dma.vmem_to_hbm [thread:$0]  %s1095_s7, 128, %s1884_s9, [#allocation4]  }
 0x386   :  { %1662 = dma.done.wait [#allocation4], 128  }
 0x387   :  { %1663 = vsyncadd [#allocation4], 4294967168 }
 0x388   :  { %1101 = vsyncpa [#allocation3], 1 }
 0x389   :  { %1102 = vsyncpa [#allocation6], 1 }
 0x38a   :  { %1103 = vsyncpa [#allocation9], 1 }
 0x38b   :  { %1104 = vsyncpa [#allocation12], 1 }
 0x38c   :  { %1105 = vsyncpa [#allocation15], 1 }
 0x38d   :  { %1106 = vsyncpa [#allocation4], 1 }

</bundles_post_ra>
